<compile_context>
chip_gen: v5e
topology: v5e:2x2
jax: 0.10.0
libtpu: 0.0.40
codegen_flags: <defaults>
</compile_context>

<pallas_src>
import functools

import jax
import jax.numpy as jnp
from jax.experimental import pallas as pl
from jax.experimental.pallas import tpu as pltpu


def _round_up(x, m):
    return ((x + m - 1) // m) * m


def _cls_head_bce_kernel(x_ref, w_ref, y_ref, loss_ref, acc_ref,
                         *, n_valid, m_valid, tn, tm):
    i = pl.program_id(0)          # N-tile
    j = pl.program_id(1)          # class-tile
    k = pl.program_id(2)          # in_channels (reduction) tile, innermost
    nk = pl.num_programs(2)

    # Init the resident (1,1) loss accumulator once, at the very first grid step.
    @pl.when((i == 0) & (j == 0) & (k == 0))
    def _init_loss():
        loss_ref[...] = jnp.zeros_like(loss_ref)

    # Init the f32 matmul accumulator at the start of every reduction sweep.
    @pl.when(k == 0)
    def _init_acc():
        acc_ref[...] = jnp.zeros_like(acc_ref)

    # MXU: acc += x_tile @ w_tile^T   (contract the in_channels tile)
    acc_ref[...] += jax.lax.dot_general(
        x_ref[...], w_ref[...],
        dimension_numbers=(((1,), (1,)), ((), ())),
        preferred_element_type=jnp.float32,
    )

    # At the last reduction step: fused sigmoid + BCE on the finished logits
    # tile, mask padded rows/cols, and accumulate the tile's loss sum.
    @pl.when(k == nk - 1)
    def _finalize():
        z = acc_ref[...]                                 # (tn, tm) f32 logits
        y = y_ref[...].astype(jnp.float32)               # (tn, tm) targets
        # BCE(sigmoid(z), y) in the numerically-stable "with-logits" form:
        #   max(z,0) - z*y + log(1 + exp(-|z|))
        per = (jnp.maximum(z, 0.0) - z * y
               + jnp.log(1.0 + jnp.exp(-jnp.abs(z))))

        rows = jax.lax.broadcasted_iota(jnp.int32, (tn, tm), 0) + i * tn
        cols = jax.lax.broadcasted_iota(jnp.int32, (tn, tm), 1) + j * tm
        valid = (rows < n_valid) & (cols < m_valid)
        per = jnp.where(valid, per, 0.0)

        tile_sum = jnp.sum(jnp.sum(per, axis=1, keepdims=True),
                           axis=0, keepdims=True)        # (1, 1)
        loss_ref[...] += tile_sum


def _vmem_limit_bytes(tn, tm, tc, itemsize):
    in_blocks = 2 * itemsize * (tn * tc + tm * tc + tn * tm)   # double-buffered inputs
    scratch = 4 * (tn * tm) + 4                                 # f32 acc + (1,1) loss
    est = in_blocks + scratch + (2 << 20)                       # headroom
    return int(min(64 * 1024 * 1024, max(est, 16 * 1024 * 1024)))


def cls_head_loss(x, w, y, *, tile_n=256, tile_m=512, tile_c=512):
    """ClsHead forward loss.

    x: (N, in_channels) features
    w: (num_classes, in_channels) fc_cls weight (bias-free Linear)
    y: (N, num_classes) BCE targets in [0, 1]
    returns scalar mean BCE loss (matches nn.BCELoss(reduction='mean')).
    """
    N, C = x.shape
    M, Cw = w.shape
    assert C == Cw, "weight in_channels mismatch"
    assert y.shape == (N, M), "target shape must be (N, num_classes)"

    # Tile sizes: sublane axis multiple of 8, lane axes multiples of 128.
    tn = _round_up(min(tile_n, N), 8)
    tm = _round_up(min(tile_m, M), 128)
    tc = _round_up(min(tile_c, C), 128)

    Np, Mp, Cp = _round_up(N, tn), _round_up(M, tm), _round_up(C, tc)
    xp = jnp.pad(x, ((0, Np - N), (0, Cp - C)))
    wp = jnp.pad(w, ((0, Mp - M), (0, Cp - C)))
    yp = jnp.pad(y, ((0, Np - N), (0, Mp - M)))

    gn, gm, gk = Np // tn, Mp // tm, Cp // tc

    kernel = functools.partial(
        _cls_head_bce_kernel, n_valid=N, m_valid=M, tn=tn, tm=tm)

    total = pl.pallas_call(
        kernel,
        out_shape=jax.ShapeDtypeStruct((1, 1), jnp.float32),
        grid_spec=pltpu.PrefetchScalarGridSpec(
            num_scalar_prefetch=0,
            grid=(gn, gm, gk),
            in_specs=[
                pl.BlockSpec((tn, tc), lambda i, j, k: (i, k)),   # x tile
                pl.BlockSpec((tm, tc), lambda i, j, k: (j, k)),   # W tile
                pl.BlockSpec((tn, tm), lambda i, j, k: (i, j)),   # y tile (resident over k)
            ],
            out_specs=pl.BlockSpec((1, 1), lambda i, j, k: (0, 0)),  # resident accumulator
            scratch_shapes=[pltpu.VMEM((tn, tm), jnp.float32)],      # f32 logits acc
        ),
        compiler_params=pltpu.CompilerParams(
            # loss accumulator is shared across every grid axis -> all "arbitrary"
            dimension_semantics=("arbitrary", "arbitrary", "arbitrary"),
            vmem_limit_bytes=_vmem_limit_bytes(tn, tm, tc, x.dtype.itemsize),
        ),
    )(xp, wp, yp)

    # 'mean' reduction with the TRUE element count (not the padded one).
    return total[0, 0] / (N * M)


def _reference_loss(x, w, y):
    logits = jnp.dot(x, w.T)
    p = jax.nn.sigmoid(logits)
    return -jnp.mean(y * jnp.log(p) + (1.0 - y) * jnp.log(1.0 - p))


if __name__ == "__main__":
    key = jax.random.PRNGKey(0)
    kx, kw, ky = jax.random.split(key, 3)

    # Small shapes consistent with ClsHead: batch x in_channels features,
    # (num_classes x in_channels) weight, (batch x num_classes) targets.
    # Chosen non-multiples of the tiles to exercise padding/masking, and small
    # tiles to exercise the multi-step grid (gn=3, gm=3, gk=3).
    N, C, M = 22, 384, 300
    x = 0.1 * jax.random.normal(kx, (N, C), dtype=jnp.float32)
    w = 0.1 * jax.random.normal(kw, (M, C), dtype=jnp.float32)   # fc_cls.weight
    y = jax.random.uniform(ky, (N, M), dtype=jnp.float32)        # BCE targets in [0,1]

    loss = cls_head_loss(x, w, y, tile_n=8, tile_m=128, tile_c=128)
    loss = jax.block_until_ready(loss)

    ref = _reference_loss(x, w, y)
    assert jnp.allclose(loss, ref, rtol=1e-3, atol=1e-3), (loss, ref)
    print("KERNEL_OK")
</pallas_src>

<mosaic_0001>
module attributes {stable_mosaic.version = 11 : i64} {
  func.func @_cls_head_bce_kernel(%arg0: i32, %arg1: i32, %arg2: i32, %arg3: memref<8x128xf32, #tpu.memory_space<vmem>>, %arg4: memref<128x128xf32, #tpu.memory_space<vmem>>, %arg5: memref<8x128xf32, #tpu.memory_space<vmem>>, %arg6: memref<1x1xf32, #tpu.memory_space<vmem>>, %arg7: memref<8x128xf32, #tpu.memory_space<vmem>>) attributes {dimension_semantics = [#tpu.dimension_semantics<arbitrary>, #tpu.dimension_semantics<arbitrary>, #tpu.dimension_semantics<arbitrary>], iteration_bounds = array<i64: 3, 3, 3>, scalar_prefetch = 0 : i64, scratch_operands = 1 : i64, tpu.core_type = #tpu.core_type<tc>, window_params = [{transform_indices = @transform_0, window_bounds = array<i64: 8, 128>}, {transform_indices = @transform_1, window_bounds = array<i64: 128, 128>}, {transform_indices = @transform_2, window_bounds = array<i64: 8, 128>}, {pipeline_mode = #tpu.pipeline_mode<synchronous>, transform_indices = @transform_3, window_bounds = array<i64: 1, 1>}]} {
    %c0_i32 = arith.constant 0 : i32
    %0 = arith.cmpi eq, %arg0, %c0_i32 : i32
    %c0_i32_0 = arith.constant 0 : i32
    %1 = arith.cmpi eq, %arg1, %c0_i32_0 : i32
    %2 = arith.andi %0, %1 : i1
    %c0_i32_1 = arith.constant 0 : i32
    %3 = arith.cmpi eq, %arg2, %c0_i32_1 : i32
    %4 = arith.andi %2, %3 : i1
    %5 = arith.extui %4 : i1 to i32
    %c0_i32_2 = arith.constant 0 : i32
    %6 = arith.cmpi ne, %5, %c0_i32_2 : i32
    scf.if %6 {
      %cst_13 = arith.constant 0.000000e+00 : f32
      %19 = vector.broadcast %cst_13 : f32 to vector<1x1xf32>
      %c0_14 = arith.constant 0 : index
      %c0_15 = arith.constant 0 : index
      %20 = vector.load %arg6[%c0_14, %c0_15] : memref<1x1xf32, #tpu.memory_space<vmem>>, vector<1x1xf32>
      tpu.vector_store %arg6[%c0_14, %c0_15], %19 {strides = array<i32>} : memref<1x1xf32, #tpu.memory_space<vmem>>, vector<1x1xf32>,
    } else {
    }
    %c0_i32_3 = arith.constant 0 : i32
    %7 = arith.cmpi eq, %arg2, %c0_i32_3 : i32
    %8 = arith.extui %7 : i1 to i32
    %c0_i32_4 = arith.constant 0 : i32
    %9 = arith.cmpi ne, %8, %c0_i32_4 : i32
    scf.if %9 {
      %cst_13 = arith.constant 0.000000e+00 : f32
      %19 = vector.broadcast %cst_13 : f32 to vector<8x128xf32>
      %c0_14 = arith.constant 0 : index
      %c0_15 = arith.constant 0 : index
      %20 = vector.load %arg7[%c0_14, %c0_15] : memref<8x128xf32, #tpu.memory_space<vmem>>, vector<8x128xf32>
      tpu.vector_store %arg7[%c0_14, %c0_15], %19 {strides = array<i32>} : memref<8x128xf32, #tpu.memory_space<vmem>>, vector<8x128xf32>,
    } else {
    }
    %c0 = arith.constant 0 : index
    %c0_5 = arith.constant 0 : index
    %10 = vector.load %arg7[%c0, %c0_5] : memref<8x128xf32, #tpu.memory_space<vmem>>, vector<8x128xf32>
    %c0_6 = arith.constant 0 : index
    %c0_7 = arith.constant 0 : index
    %11 = vector.load %arg3[%c0_6, %c0_7] : memref<8x128xf32, #tpu.memory_space<vmem>>, vector<8x128xf32>
    %c0_8 = arith.constant 0 : index
    %c0_9 = arith.constant 0 : index
    %12 = vector.load %arg4[%c0_8, %c0_9] : memref<128x128xf32, #tpu.memory_space<vmem>>, vector<128x128xf32>
    %cst = arith.constant dense<0.000000e+00> : vector<8x128xf32>
    %13 = tpu.matmul %11, %12, %cst {dimension_numbers = #tpu.dot_dimension_numbers<[1], [1], [0], [0], [0, 0, 1, 0], [], []>} : vector<8x128xf32>, vector<128x128xf32>, vector<8x128xf32> -> vector<8x128xf32>
    %14 = arith.addf %10, %13 : vector<8x128xf32>
    %c0_10 = arith.constant 0 : index
    %c0_11 = arith.constant 0 : index
    %15 = vector.load %arg7[%c0_10, %c0_11] : memref<8x128xf32, #tpu.memory_space<vmem>>, vector<8x128xf32>
    tpu.vector_store %arg7[%c0_10, %c0_11], %14 {strides = array<i32>} : memref<8x128xf32, #tpu.memory_space<vmem>>, vector<8x128xf32>,
    %c2_i32 = arith.constant 2 : i32
    %16 = arith.cmpi eq, %arg2, %c2_i32 : i32
    %17 = arith.extui %16 : i1 to i32
    %c0_i32_12 = arith.constant 0 : i32
    %18 = arith.cmpi ne, %17, %c0_i32_12 : i32
    scf.if %18 {
      %c0_13 = arith.constant 0 : index
      %c0_14 = arith.constant 0 : index
      %19 = vector.load %arg7[%c0_13, %c0_14] : memref<8x128xf32, #tpu.memory_space<vmem>>, vector<8x128xf32>
      %c0_15 = arith.constant 0 : index
      %c0_16 = arith.constant 0 : index
      %20 = vector.load %arg5[%c0_15, %c0_16] : memref<8x128xf32, #tpu.memory_space<vmem>>, vector<8x128xf32>
      %cst_17 = arith.constant 0.000000e+00 : f32
      %21 = vector.broadcast %cst_17 : f32 to vector<8x128xf32>
      %22 = arith.maximumf %19, %21 : vector<8x128xf32>
      %23 = arith.mulf %19, %20 : vector<8x128xf32>
      %24 = arith.subf %22, %23 : vector<8x128xf32>
      %25 = math.absf %19 : vector<8x128xf32>
      %cst_18 = arith.constant 0.000000e+00 : f32
      %26 = vector.broadcast %cst_18 : f32 to vector<8x128xf32>
      %27 = arith.subf %26, %25 : vector<8x128xf32>
      %28 = math.exp %27 : vector<8x128xf32>
      %cst_19 = arith.constant 1.000000e+00 : f32
      %29 = vector.broadcast %cst_19 : f32 to vector<8x128xf32>
      %30 = arith.addf %29, %28 : vector<8x128xf32>
      %31 = math.log %30 : vector<8x128xf32>
      %32 = arith.addf %24, %31 : vector<8x128xf32>
      %33 = tpu.iota {dimensions = array<i32: 0>} : vector<8x128xi32>
      %c8_i32 = arith.constant 8 : i32
      %34 = arith.muli %arg0, %c8_i32 : i32
      %35 = vector.broadcast %34 : i32 to vector<8x128xi32>
      %36 = arith.addi %33, %35 : vector<8x128xi32>
      %37 = tpu.iota {dimensions = array<i32: 1>} : vector<8x128xi32>
      %c128_i32 = arith.constant 128 : i32
      %38 = arith.muli %arg1, %c128_i32 : i32
      %39 = vector.broadcast %38 : i32 to vector<8x128xi32>
      %40 = arith.addi %37, %39 : vector<8x128xi32>
      %c22_i32 = arith.constant 22 : i32
      %41 = vector.broadcast %c22_i32 : i32 to vector<8x128xi32>
      %42 = arith.cmpi slt, %36, %41 : vector<8x128xi32>
      %c300_i32 = arith.constant 300 : i32
      %43 = vector.broadcast %c300_i32 : i32 to vector<8x128xi32>
      %44 = arith.cmpi slt, %40, %43 : vector<8x128xi32>
      %45 = arith.andi %42, %44 : vector<8x128xi1>
      %cst_20 = arith.constant 0.000000e+00 : f32
      %46 = vector.broadcast %cst_20 : f32 to vector<8x128xf32>
      %47 = arith.select %45, %32, %46 : vector<8x128xi1>, vector<8x128xf32>
      %cst_21 = arith.constant dense<0.000000e+00> : vector<8xf32>
      %48 = vector.multi_reduction <add>, %47, %cst_21 [1] : vector<8x128xf32> to vector<8xf32>
      %49 = vector.shape_cast %48 : vector<8xf32> to vector<8x1xf32>
      %cst_22 = arith.constant dense<0.000000e+00> : vector<1xf32>
      %50 = vector.multi_reduction <add>, %49, %cst_22 [0] : vector<8x1xf32> to vector<1xf32>
      %51 = vector.shape_cast %50 : vector<1xf32> to vector<1x1xf32>
      %c0_23 = arith.constant 0 : index
      %c0_24 = arith.constant 0 : index
      %52 = vector.load %arg6[%c0_23, %c0_24] : memref<1x1xf32, #tpu.memory_space<vmem>>, vector<1x1xf32>
      %53 = arith.addf %52, %51 : vector<1x1xf32>
      %c0_25 = arith.constant 0 : index
      %c0_26 = arith.constant 0 : index
      %54 = vector.load %arg6[%c0_25, %c0_26] : memref<1x1xf32, #tpu.memory_space<vmem>>, vector<1x1xf32>
      tpu.vector_store %arg6[%c0_25, %c0_26], %53 {strides = array<i32>} : memref<1x1xf32, #tpu.memory_space<vmem>>, vector<1x1xf32>,
    } else {
    }
    return
  }
  func.func @transform_0(%arg0: i32, %arg1: i32, %arg2: i32) -> (i32, i32) {
    %c0_i32 = arith.constant 0 : i32
    return %arg0, %arg2 : i32, i32
  }
  func.func @transform_1(%arg0: i32, %arg1: i32, %arg2: i32) -> (i32, i32) {
    %c0_i32 = arith.constant 0 : i32
    return %arg1, %arg2 : i32, i32
  }
  func.func @transform_2(%arg0: i32, %arg1: i32, %arg2: i32) -> (i32, i32) {
    %c0_i32 = arith.constant 0 : i32
    return %arg0, %arg1 : i32, i32
  }
  func.func @transform_3(%arg0: i32, %arg1: i32, %arg2: i32) -> (i32, i32) {
    %c0_i32 = arith.constant 0 : i32
    %c0_i32_0 = arith.constant 0 : i32
    %c0_i32_1 = arith.constant 0 : i32
    return %c0_i32, %c0_i32_0 : i32, i32
  }
}

</mosaic_0001>

<bundles_post_ra>
// kernel: tpu_custom_call.1
= control target key start
LH: loop header
LB: loop body
LE: loop exit
PB: predicated region body
PF: predicated region fallthrough
CT: control target
= control target key end

     0   :  { %s1304_s0 = inlined_call_operand.hbm [shape: f32[24,384], index: 0, kind: input, shape index: {}]   ;;  %s1305_s1 = inlined_call_operand.hbm [shape: f32[384,384], index: 1, kind: input, shape index: {}]   ;;  %s1306_s2 = inlined_call_operand.hbm [shape: f32[24,384], index: 2, kind: input, shape index: {}]   ;;  %s1307_s3 = inlined_call_operand.hbm [shape: f32[1,1], index: 3, kind: output, shape index: {}]  }
   0x1   :  { %1315 = sst [smem:[#allocation24_spill]] %s1305_s1 }
   0x2   :  { %1316 = sst [smem:[#allocation25_spill]] %s1307_s3 }
   0x3   :  { %8 = vsyncpa [#allocation4], 0 }
   0x4   :  { %10 = vsyncpa [#allocation4 + $0x1], 0 }
   0x5   :  { %11 = vsyncpa [#allocation7], 0 }
   0x6   :  { %13 = vsyncpa [#allocation7 + $0x1], 0 }
   0x7   :  { %14 = vsyncpa [#allocation5], 0  ;;  %s985_s12 = smov 0   ;;  %s987_s13 = smov 0  }
   0x8   :  { %s989_s14 = smov 0   ;;  %s991_s15 = smov 0  }
   0x9   :  { %s993_s16 = smov 0   ;;  %s995_s17 = smov 0  }
   0xa   :  { %s997_s18 = smov 0   ;;  %s999_s19 = smov 0  }
   0xb   :  { %s1001_s20 = smov 0   ;;  %s1003_s21 = smov 0  }
   0xc   :  { %s1005_s22 = smov 0   ;;  %s1007_s23 = smov 0  }
   0xd   :  { %s1009_s24 = smov 0   ;;  %s1011_s25 = smov 0  }
   0xe   :  { %s1013_s26 = smov 0   ;;  %s1015_s27 = smov 0  }
   0xf LB: > { %1317 = sst [smem:[#allocation14_spill]] %s929_s20  ;;  %p56_p0 = scmp.eq.s32.totalorder %s957_s27, 0  ;;  %s957_s27 = sphi %s1015_s27, %s20_s27   ;;  %s953_s26 = sphi %s1013_s26, %s1366_s26   ;;  %s949_s25 = sphi %s1011_s25, %s1365_s25   ;;  %s945_s24 = sphi %s1009_s24, %s1364_s24   ;;  %s941_s23 = sphi %s1007_s23, %s1348_s23   ;;  %s937_s22 = sphi %s1005_s22, %s1363_s22   ;;  %s933_s21 = sphi %s1003_s21, %s1362_s21   ;;  %s929_s20 = sphi %s1001_s20, %s1361_s20   ;;  %s925_s19 = sphi %s999_s19, %s1360_s19   ;;  %s921_s18 = sphi %s997_s18, %s1359_s18   ;;  %s917_s17 = sphi %s995_s17, %s1358_s17   ;;  %s913_s16 = sphi %s993_s16, %s1357_s16   ;;  %s909_s15 = sphi %s991_s15, %s1356_s15   ;;  %s905_s14 = sphi %s989_s14, %s1355_s14   ;;  %s901_s13 = sphi %s987_s13, %s1354_s13   ;;  %s897_s12 = sphi %s985_s12, %s1352_s12  }
  0x10   : > { %1318 = sst [smem:[#allocation15_spill]] %s933_s21  ;;  %p83_p1 = scmp.ne.s32.totalorder %s917_s17, %s913_s16 }
  0x11   : > { %1319 = sst [smem:[#allocation16_spill]] %s937_s22  ;;  %p89_p2 = scmp.ne.s32.totalorder %s913_s16, %s909_s15 }
  0x12   : > { %1320 = sst [smem:[#allocation17_spill]] %s941_s23  ;;  %p556_p3 = scmp.lt.s32.totalorder %s957_s27, 27 }
  0x13   : > { %1321 = sst [smem:[#allocation18_spill]] %s953_s26  ;;  %p85_p4 = por %p83_p1, %p56_p0 }
  0x14   : > { %s183_s29 = sand.u32 1, %s957_s27   ;;  %s185_s30 = sand.u32 1, %s917_s17  }
  0x15   : > { %s515_s4 = sshll.u32 %s185_s30, 7  ;;  %s534_s5 = smul.u32 48, %s949_s25 }
  0x16   : > { %p1079_p5 = pnand %p556_p3, %p85_p4  ;;  %s187_s8 = scalar_lea.vmem [#allocation6], %s515_s4 }
  0x17   : > { %s192_s7 = sadd.s32 %s945_s24, %s534_s5  ;;  %s197_s9 = sshll.u32 %s187_s8, 4  ;;  %s198_s9 = int_to_ptr.vmem [resolvable:$true] %s197_s9 }
  0x18   : > { %s518_s10 = sshll.u32 %s192_s7, 3  ;;  %s1323_s1 = sld [smem:[#allocation24_spill]] }
  0x19   : > { %p521_p6 = scmp.ge.s32.totalorder %s957_s27, 1  ;;  %s1088_s21 = scalar_lea.sflag [#allocation7], %s183_s29 }
  0x1a   : > { %s959_s4 = smov 384   ;;  %s960_s5 = smov 128  }
  0x1b   : > { %s961_s7 = smov 8   ;;  %p226_p7 = scmp.lt.s32.totalorder %s957_s27, 28 }
  0x1c   : > { %s1099_s8 = sadd.s32 4294967295, %s957_s27   ;;  %s32_s29 = sadd.s32 1, %s945_s24 }
  0x1d   : > { %p1094_p8 = pnand %p521_p6, %p226_p7  ;;  %p33_p9 = scmp.ge.s32.totalorder %s32_s29, 3 }
  0x1e   : > { %s194_s30 = scalar_lea.hbm %s1323_s1, %s518_s10  ;;  %s35_s10 = sadd.s32 1, %s949_s25 }
  0x1f   : > { %s195_s3 = sshll.u32 %s194_s30, 4  ;;  %s39_s11 = sadd.s32 1, %s953_s26  ;;  %s196_s3 = int_to_ptr.hbm [resolvable:$true] %s195_s3 }
  0x20   : > { %552 = dma.hbm_to_vmem [thread:$0]  (!%p1079_p5), %s196_s3, 2048, %s198_s9, %s1088_s21, %s959_s4, %s960_s5, %s961_s7  }
  0x21   : > { %s48_s30 = sadd.s32 1, %s929_s20  ;;  %s1368_s29 = smov (%p33_p9, %s32_s29), 0 }
  0x22   : > { %1325 = sst [smem:[#allocation19_spill]] %s1368_s29  ;;  %s1370_s10 = smov (!%p33_p9, %s35_s10), %s949_s25 }
  0x23   : > { %s44_s3 = ssub.s32 %s945_s24, %s1368_s29  ;;  %p55_p10 = scmp.ne.s32.totalorder %s929_s20, %s925_s19 }
  0x24   : > { %p37_p11 = scmp.ge.s32.totalorder %s1370_s10, 3  ;;  %p61_p12 = scmp.ne.s32.totalorder %s925_s19, %s921_s18 }
  0x25   : > { %p1116_p13 = por %p56_p0, %p55_p10  ;;  %p62_p1 = scmp.eq.s32.totalorder %s1099_s8, 0 }
  0x26   : > { %s1372_s10 = smov (%p37_p11, %s1370_s10), 0  ;;  %s1374_s11 = smov (!%p37_p11, %s39_s11), %s953_s26 }
  0x27   : > { %1327 = sst [smem:[#allocation20_spill]] %s1372_s10  ;;  %p1126_p4 = por %p62_p1, %p61_p12 }
  0x28   : > { %s71_s4 = ssub.s32 %s949_s25, %s1372_s10  ;;  %p41_p5 = scmp.ge.s32.totalorder %s1374_s11, 3 }
  0x29   : > { %s73_s18 = sor.u32 %s71_s4, %s44_s3  ;;  %p1137_p7 = por %p89_p2, %p62_p1 }
  0x2a   : > { %p74_p6 = scmp.eq.s32.totalorder %s73_s18, 0  ;;  %s1376_s11 = smov (%p41_p5, %s1374_s11), 0 }
  0x2b   : > { %s1329_s5 = scalar_select %p1137_p7, 1, 0 }
  0x2c   : > { %1331 = sst [smem:[#allocation22_spill]] %s1376_s11  ;;  %s1332_s7 = sadd.s32 1, %s917_s17 }
  0x2d   : > { %1330 = sst [smem:[#allocation21_spill]] %s1329_s5  ;;  %s43_s29 = ssub.s32 %s953_s26, %s1376_s11 }
  0x2e   : > { %s1146_s1 = scalar_select %p74_p6, %s917_s17, %s1332_s7  }
  0x2f   : > { %s162_s10 = sand.u32 1, %s929_s20   ;;  %s45_s22 = sor.u32 %s44_s3, %s43_s29 }
  0x30   : > { %s101_s23 = sor.u32 %s71_s4, %s43_s29  ;;  %p46_p9 = scmp.eq.s32.totalorder %s45_s22, 0 }
  0x31   : > { %p1151_p10 = scmp.eq.s32.totalorder %s101_s23, 0  ;;  %s513_s15 = sshll.u32 %s162_s10, 3 }
  0x32   : > { %s1156_s5 = scalar_select %p46_p9, %s929_s20, %s48_s30  }
  0x33   : > { %s533_s7 = smul.u32 3, %s953_s26  ;;  %s166_s11 = scalar_lea.vmem [#allocation3], %s513_s15 }
  0x34   : > { %1334 = sst [smem:[#allocation23_spill]] %s1156_s5  ;;  %s176_s29 = sshll.u32 %s166_s11, 4  ;;  %s177_s29 = int_to_ptr.vmem [resolvable:$true] %s176_s29 }
  0x35   : > { %p547_p2 = pnand %p556_p3, %p1116_p13  ;;  %s170_s22 = sadd.s32 %s945_s24, %s533_s7 }
  0x36   : > { %s514_s23 = sshll.u32 %s170_s22, 3  ;;  %s163_s20 = scalar_lea.sflag [#allocation4], %s162_s10 }
  0x37   : > { %s172_s30 = scalar_lea.hbm %s1304_s0, %s514_s23  ;;  %s104_s26 = sadd.s32 1, %s905_s14 }
  0x38   : > { %s174_s5 = sshll.u32 %s172_s30, 4  ;;  %p111_p11 = scmp.ne.s32.totalorder %s905_s14, %s901_s13  ;;  %s175_s5 = int_to_ptr.hbm [resolvable:$true] %s174_s5 }
  0x39   : > { %549 = dma.hbm_to_vmem [thread:$0]  (!%p547_p2), %s175_s5, 128, %s177_s29, %s163_s20  }
  0x3a   : > { %s1171_s11 = scalar_select %p1151_p10, %s905_s14, %s104_s26  }
  0x3b   : > { %p117_p12 = scmp.ne.s32.totalorder %s901_s13, %s897_s12  ;;  %s209_s6 = sand.u32 1, %s905_s14  }
  0x3c   : > { %s215_s15 = sadd.s32 %s949_s25, %s533_s7  ;;  %p113_p13 = por %p111_p11, %p56_p0 }
  0x3d   : > { %p1183_p5 = por %p117_p12, %p62_p1  ;;  %s519_s23 = sshll.u32 %s209_s6, 3 }
  0x3e   : > { %s520_s10 = sshll.u32 %s215_s15, 3  ;;  %s211_s29 = scalar_lea.vmem [#allocation8], %s519_s23 }
  0x3f   : > { %s217_s18 = scalar_lea.hbm %s1306_s2, %s520_s10  ;;  %s221_s3 = sshll.u32 %s211_s29, 4  ;;  %s222_s3 = int_to_ptr.vmem [resolvable:$true] %s221_s3 }
  0x40   : > { %s219_s26 = sshll.u32 %s217_s18, 4  ;;  %p553_p6 = pnand %p556_p3, %p113_p13  ;;  %s220_s26 = int_to_ptr.hbm [resolvable:$true] %s219_s26 }
  0x41   : > { %230 = sbr.rel (%p1094_p8) target bundleno = 484 (0x1e4), region = 32  ;;  %s232_s12 = sand.u32 (!%p1094_p8), 1, %s925_s19  }
  0x42   : > { %555 = dma.hbm_to_vmem [thread:$0]  (!%p553_p6), %s220_s26, 128, %s222_s3, %s1088_s21  }
  0x43   : > { %s1196_s7 = sshll.u32 (!%p1094_p8), %s232_s12, 3  ;;  %s233_s4 = scalar_lea.sflag (!%p1094_p8), [#allocation4], %s232_s12 }
  0x44   : > { %s236_s30 = scalar_lea.vmem (!%p1094_p8), [#allocation3], %s1196_s7 }
  0x46   : > { %880 = dma.done.wait (%p1126_p4), %s233_s4, 128  }
  0x47   : > { %882 = vsyncadd (%p1126_p4), %s233_s4, 4294967168  ;;  %s242_s21 = sand.u32 1, %s1099_s8   ;;  %s244_s15 = sand.u32 1, %s913_s16  }
  0x48   : > { %s523_s28 = sshll.u32 %s244_s15, 7  ;;  %s243_s23 = scalar_lea.sflag [#allocation7], %s242_s21 }
  0x49   : > { %s1205_s10 = scalar_lea.vmem [#allocation6], %s523_s28 }
  0x4a   : > { %884 = dma.done.wait (%p1137_p7), %s243_s23, 2048  }
  0x4b   : > { %886 = vsyncadd (%p1137_p7), %s243_s23, 4294965248  ;;  %s254_s20 = sand.u32 1, %s901_s13  }
  0x4c   : > { %s1212_s5 = sshll.u32 %s254_s20, 3 }
  0x4d   : > { %s256_s9 = scalar_lea.vmem [#allocation8], %s1212_s5 }
  0x4e   : > { %888 = dma.done.wait (%p1183_p5), %s243_s23, 128  }
  0x4f   : > { %890 = vsyncadd (%p1183_p5), %s243_s23, 4294967168  ;;  %s1337_s18 = sld [smem:[#allocation17_spill]] }
  0x50   : > { %s1338_s26 = sld [smem:[#allocation16_spill]] }
  0x51   : > { %s1339_s29 = sld [smem:[#allocation15_spill]] }
  0x55   : > { %p286_p0 = scmp.eq.s32.totalorder %s1337_s18, 0 }
  0x56   : > { %p287_p3 = scmp.eq.s32.totalorder %s1338_s26, 0 }
  0x57   : > { %p290_p1 = scmp.eq.s32.totalorder %s1339_s29, 0 }
  0x58   : > { %p288_p8 = pnand %p287_p3, %p286_p0 }
  0x5a   : > { %p289_p4 = pneg %p288_p8 }
  0x5c   : > { %p291_p7 = pnand %p290_p1, %p289_p4 }
  0x5e   : > { %294 = sbr.rel (%p291_p7) target bundleno = 101 (0x65), region = 48 }
  0x63   : > { %vm295_vm0 = vcmask 0   ;;  %v962_v0 = vmov 0.0  }
  0x64   : > { %296 = vst.msk [vmem:[#allocation9] sm:$0x1] %vm295_vm0, %v962_v0 }
  0x65 PF: > { %s1340_s3 = sld [smem:[#allocation15_spill]] }
  0x6b   : > { %p525_p9 = scmp.ne.s32.totalorder %s1340_s3, 0 }
  0x6d   : > { %299 = sbr.rel (%p525_p9) target bundleno = 116 (0x74), region = 52 }
  0x72   : > { %v963_v1 = vmov 0.0  }
  0x73   : > { %300 = vst [vmem:[#allocation2] sm:$0xff] %v963_v1 }
  0x74 PF: > { %v318_v2 = vld [vmem:[%s1205_s10 + $0x78] sm:$0xff]  ;;  %v317_v3 = vld [vmem:[%s1205_s10 + $0x70] sm:$0xff]  ;;  %v316_v4 = vld [vmem:[%s1205_s10 + $0x68] sm:$0xff]  ;;  %s1341_s22 = sld [smem:[#allocation15_spill]] }
  0x75   : > { %319 = vmatpush.xpose.msra.mxu0 %v318_v2  ;;  %v315_v5 = vld [vmem:[%s1205_s10 + $0x60] sm:$0xff]  ;;  %v314_v6 = vld [vmem:[%s1205_s10 + $0x58] sm:$0xff]  ;;  %v313_v7 = vld [vmem:[%s1205_s10 + $0x50] sm:$0xff] }
  0x76   : > { %v312_v8 = vld [vmem:[%s1205_s10 + $0x48] sm:$0xff]  ;;  %v311_v9 = vld [vmem:[%s1205_s10 + $0x40] sm:$0xff]  ;;  %v310_v10 = vld [vmem:[%s1205_s10 + $0x38] sm:$0xff] }
  0x77   : > { %v309_v11 = vld [vmem:[%s1205_s10 + $0x30] sm:$0xff]  ;;  %v308_v12 = vld [vmem:[%s1205_s10 + $0x28] sm:$0xff]  ;;  %v307_v13 = vld [vmem:[%s1205_s10 + $0x20] sm:$0xff] }
  0x78   : > { %v306_v14 = vld [vmem:[%s1205_s10 + $0x18] sm:$0xff]  ;;  %v305_v15 = vld [vmem:[%s1205_s10 + $0x10] sm:$0xff]  ;;  %v304_v16 = vld [vmem:[%s1205_s10 + $0x8] sm:$0xff] }
  0x79   : > { %320 = vmatpush.xpose.msra.mxu0 %v317_v3  ;;  %v303_v17 = vld [vmem:[%s1205_s10] sm:$0xff]  ;;  %v302_v18 = vld [vmem:[%s236_s30] sm:$0xff] }
  0x7a   : > { %v301_v19 = vld [vmem:[#allocation2] sm:$0xff]  ;;  %p526_p10 = scmp.ne.s32.totalorder %s1341_s22, 2 }
  0x7b   : > { %s1342_s12 = sld [smem:[#allocation17_spill]] (!%p526_p10) }
  0x7c   : > { %s1343_s4 = sld [smem:[#allocation16_spill]] (!%p526_p10) }
  0x7d   : > { %321 = vmatpush.xpose.msra.mxu0 %v316_v4 }
  0x81   : > { %322 = vmatpush.xpose.msra.mxu0 %v315_v5  ;;  %s527_s6 = sshll.u32 (!%p526_p10), %s1342_s12, 3 }
  0x82   : > { %s528_s7 = sshll.u32 (!%p526_p10), %s1343_s4, 7 }
  0x85   : > { %323 = vmatpush.xpose.msra.mxu0 %v314_v6 }
  0x89   : > { %324 = vmatpush.xpose.msra.mxu0 %v313_v7 }
  0x8d   : > { %325 = vmatpush.xpose.msra.mxu0 %v312_v8 }
  0x91   : > { %326 = vmatpush.xpose.msra.mxu0 %v311_v9 }
  0x95   : > { %327 = vmatpush.xpose.msra.mxu0 %v310_v10 }
  0x99   : > { %328 = vmatpush.xpose.msra.mxu0 %v309_v11 }
  0x9d   : > { %329 = vmatpush.xpose.msra.mxu0 %v308_v12 }
  0xa1   : > { %330 = vmatpush.xpose.msra.mxu0 %v307_v13 }
  0xa5   : > { %331 = vmatpush.xpose.msra.mxu0 %v306_v14 }
  0xa9   : > { %332 = vmatpush.xpose.msra.mxu0 %v305_v15 }
  0xad   : > { %333 = vmatpush.xpose.msra.mxu0 %v304_v16 }
  0xb1   : > { %334 = vmatpush.xpose.msra.mxu0 %v303_v17 }
  0xb4   : > { %335 = vmatmul.f32.vlgmr.msra.gmra.mxu0 %v302_v18 }
 0x130   : > { %344 = sbr.rel (%p526_p10) target bundleno = 474 (0x1da), region = 56 }
 0x131   : > { %v336_v20 = vpop.f32.mrf.mxu0 }
 0x132   : > { %v339_v21 = vadd.f32 %v336_v20, %v301_v19 }
 0x134   : > { %340 = vst [vmem:[#allocation2] sm:$0xff] %v339_v21 }
 0x135   : > { %v358_v26 = vlaneseq  ;;  %v346_v30 = vld [vmem:[%s256_s9] sm:$0xff]  ;;  %v361_v32 = vstv %s527_s6  ;;  %v366_v33 = vstv %s528_s7  ;;  %v380_v49 = vld [vmem:[#allocation9] sm:$0x1]  ;;  %vm382_vm4 = vcmask 0  }
 0x137   : > { %v359_v28 = vshrl.u32 %v358_v26, 7  ;;  %v364_v29 = vand.u32 127, %v358_v26 }
 0x139   : > { %v362_v36 = vadd.s32 %v361_v32, %v359_v28  ;;  %v367_v37 = vadd.s32 %v366_v33, %v364_v29 }
 0x13b   : > { %v345_v22 = vld [vmem:[#allocation2] sm:$0xff]  ;;  %vm368_vm1 = vcmp.lt.s32.totalorder %v362_v36, 22  ;;  %vm369_vm2 = vcmp.lt.s32.totalorder %v367_v37, 300 }
 0x13c   : > { %v350_v23 = vand.u32 2147483647, %v345_v22  ;;  %v347_v34 = vmax.f32 %v345_v22, 0.0  ;;  %v348_v35 = vmul.f32 %v346_v30, %v345_v22  ;;  %vm370_vm3 = vmand %vm368_vm1, %vm369_vm2 }
 0x13e   : > { %v351_v24 = vsub.f32 0.0, %v350_v23  ;;  %v349_v38 = vsub.f32 %v347_v34, %v348_v35 }
 0x140   : > { %v352_v25 = vmul.f32 1.442695, %v351_v24 }
 0x142   : > { %693 = vpow2.f32 %v352_v25 }
 0x148   : > { %v694_v27 = vpop.eup %693 }
 0x149   : > { %v354_v31 = vadd.f32 1.0, %v694_v27 }
 0x14b   : > { %695 = vlog2.f32 %v354_v31 }
 0x151   : > { %v696_v39 = vpop.eup %695 }
 0x152   : > { %v356_v40 = vmul.f32 0.6931472, %v696_v39 }
 0x154   : > { %v357_v41 = vadd.f32 %v356_v40, %v349_v38 }
 0x156   : > { %v371_v42 = vsel %vm370_vm3, %v357_v41, 0.0 }
 0x157   : > { %372 = vadd.xlane.f32.xlu0 %v371_v42 }
 0x1ca   : > { %v373_v43 = vpop.xlane.xlu0 %372 }
 0x1cb   : > { %v374_v44 = vrot.slane %v373_v43, 4 }
 0x1cd   : > { %v375_v45 = vadd.f32 %v374_v44, %v373_v43 }
 0x1cf   : > { %v376_v46 = vrot.slane %v375_v45, 2 }
 0x1d1   : > { %v377_v47 = vadd.f32 %v376_v46, %v375_v45 }
 0x1d3   : > { %v378_v48 = vrot.slane %v377_v47, 1 }
 0x1d5   : > { %v379_v50 = vadd.f32 %v378_v48, %v377_v47 }
 0x1d7   : > { %v381_v51 = vadd.f32 %v380_v49, %v379_v50 }
 0x1d9   : > { %383 = vst.msk [vmem:[#allocation9] sm:$0x1] %vm382_vm4, %v381_v51 }
 0x1da PF: > { %p557_p2 = scmp.eq.s32.totalorder %s1099_s8, 26  ;;  %s1344_s15 = sld [smem:[#allocation25_spill]] }
 0x1db   : > { %s964_s23 = smov [#allocation9]  }
 0x1dc   : > { %s390_s10 = sshll.u32 %s964_s23, 4  ;;  %s391_s10 = int_to_ptr.vmem [resolvable:$true] %s390_s10 }
 0x1e0   : > { %s392_s28 = sshll.u32 %s1344_s15, 4  ;;  %s393_s28 = int_to_ptr.hbm [resolvable:$true] %s392_s28 }
 0x1e1   : > { %543 = dma.vmem_to_hbm [thread:$0]  (%p557_p2), %s391_s10, 16, %s393_s28, [#allocation5]  }
 0x1e2   : > { %892 = dma.done.wait (%p557_p2), [#allocation5], 16  }
 0x1e3   : > { %894 = vsyncadd (%p557_p2), [#allocation5], 4294967280 }
 0x1e4 PF: > { %s20_s27 = sadd.s32 1, %s957_s27   ;;  %s1346_s8 = sld [smem:[#allocation14_spill]] }
 0x1e5   : > { %p1251_p11 = scmp.ge.s32.totalorder %s20_s27, 29   ;;  %s1347_s5 = sld [smem:[#allocation23_spill]] }
 0x1e6   : > { %s1348_s23 = sld [smem:[#allocation18_spill]]  ;;  %s1352_s12 = smov %s901_s13 }
 0x1e7   : > { %s1349_s9 = sld [smem:[#allocation19_spill]]  ;;  %s1354_s13 = smov %s905_s14 }
 0x1e8   : > { %s1350_s26 = sld [smem:[#allocation20_spill]]  ;;  %s1355_s14 = smov %s1171_s11 }
 0x1e9   : > { %s1351_s29 = sld [smem:[#allocation22_spill]]  ;;  %s1356_s15 = smov %s913_s16 }
 0x1ea   : > { %s1357_s16 = smov %s917_s17  ;;  %s1358_s17 = smov %s1146_s1 }
 0x1eb   : > { %s1359_s18 = smov %s925_s19  ;;  %s1360_s19 = smov %s1346_s8 }
 0x1ec   : > { %s1361_s20 = smov %s1347_s5  ;;  %s1362_s21 = smov %s945_s24 }
 0x1ed   : > { %s1363_s22 = smov %s949_s25  ;;  %s1364_s24 = smov %s1349_s9 }
 0x1ee   : > { %s1365_s25 = smov %s1350_s26  ;;  %19 = sbr.rel (!%p1251_p11) target bundleno = 15 (0xf), region = 105 }
 0x1ef   : > { %s1366_s26 = smov %s1351_s29 }
 0x1f3   :  { %406 = vsyncpa [#allocation4], 1 }
 0x1f4   :  { %408 = vsyncpa [#allocation4 + $0x1], 1 }
 0x1f5   :  { %409 = vsyncpa [#allocation7], 1 }
 0x1f6   :  { %411 = vsyncpa [#allocation7 + $0x1], 1 }
 0x1f7   :  { %412 = vsyncpa [#allocation5], 1 }
 0x1f8   :  { %414 = vsyncpa [#allocation5 + $0x1], 1 }

</bundles_post_ra>
